<compile_context>
chip_gen: v5e
topology: v5e:2x2
jax: 0.10.0
libtpu: 0.0.40
codegen_flags: <defaults>
</compile_context>

<pallas_src>
import jax
import jax.numpy as jnp
from jax.experimental import pallas as pl
from jax.experimental.pallas import tpu as pltpu


def _round_up(x, m):
    return (x + m - 1) // m * m


def _pick_spatial_tile(hw_pad, cap_lanes, min_blocks):
    """Largest multiple-of-128 divisor of hw_pad that fits cap_lanes and (if
    achievable) leaves at least min_blocks spatial blocks."""
    m = hw_pad // 128
    candidates = [d * 128 for d in range(1, m + 1) if m % d == 0]
    ok = [t for t in candidates if t <= cap_lanes and hw_pad // t >= min_blocks]
    if ok:
        return max(ok)
    ok = [t for t in candidates if t <= cap_lanes]
    if ok:
        return max(ok)
    return 128


def _self_mask_kernel(x_ref, w1_ref, b1_ref, w2_ref, b2_ref, w3_ref, b3_ref, o_ref):
    # x_ref / o_ref : (NB, C, T)  lane-dense spatial tile of NB images.
    # w1: (p1, C), b1: (p1, 1)   -- BN1 scale folded into w1, shift in b1
    # w2: (p2, p1), b2: (p2, 1)  -- BN2 folded the same way
    # w3: (p2, 1),  b3: (1, 1)   -- BN3 scale folded into w3, (shift + 1) in b3
    w1 = w1_ref[...]
    w2 = w2_ref[...]
    b1 = b1_ref[...].astype(jnp.float32)
    b2 = b2_ref[...].astype(jnp.float32)
    w3 = w3_ref[...].astype(jnp.float32)
    b3 = b3_ref[...].astype(jnp.float32)

    nb = x_ref.shape[0]
    for i in range(nb):                      # nb is a small compile-time constant
        x = x_ref[i]                         # (C, T), stays in input dtype (bf16 ok)

        # conv1 (1x1) + bn1 + relu  -> (p1, T) on the MXU, f32 accumulation.
        h1 = jnp.dot(w1, x, preferred_element_type=jnp.float32)
        h1 = jnp.maximum(h1 + b1, 0.0).astype(w2.dtype)   # match dot operand dtypes

        # conv2 (1x1) + bn2 + relu  -> (p2, T)
        h2 = jnp.dot(w2, h1, preferred_element_type=jnp.float32)
        h2 = jnp.maximum(h2 + b2, 0.0)

        # conv3 (1x1, M=1, K=p2) + bn3 + 1 on the VPU/XLU (too small for the MXU).
        a = jnp.sum(h2 * w3, axis=0, keepdims=True) + b3   # (1, T), f32

        # out = (atten_map + 1) * origin_x, broadcast over the C sublanes.
        o_ref[i] = (a * x).astype(o_ref.dtype)


def self_mask_block_forward(x_nchw, params, *, target_block_bytes=2 << 20):
    """x_nchw: [N, C, H, W] (f32 or bf16).  params: folded weights (see fold_params)."""
    N, C, H, W = x_nchw.shape
    HW = H * W
    itemsize = jnp.dtype(x_nchw.dtype).itemsize
    x3d = x_nchw.reshape(N, C, HW)

    # Keep MXU operands the same dtype as x; biases/w3 are upcast in-kernel.
    w1 = params["w1"].astype(x_nchw.dtype)
    w2 = params["w2"].astype(x_nchw.dtype)
    b1, b2, w3, b3 = params["b1"], params["b2"], params["w3"], params["b3"]
    p1, p2 = w1.shape[0], w2.shape[0]

    # ---- spatial tiling: avoid extra HBM passes from padding where possible ----
    min_spatial_blocks = 2 if N == 1 else 1       # give v7x's 2nd TC something to do
    cap_lanes = max(128, (target_block_bytes // max(1, C * itemsize)) // 128 * 128)

    pad_to = 0
    if HW % 128 == 0:
        HW_pad = HW
        tile = _pick_spatial_tile(HW_pad, cap_lanes, min_spatial_blocks)
    elif C * HW * itemsize <= 4 * target_block_bytes:
        HW_pad = HW                                # full-HW block (equals array dim)
        tile = HW
    else:
        HW_pad = _round_up(HW, 128)                # fallback: pad to 128 grain only
        pad_to = HW_pad
        tile = _pick_spatial_tile(HW_pad, cap_lanes, min_spatial_blocks)

    if pad_to:
        x3d = jnp.pad(x3d, ((0, 0), (0, 0), (0, pad_to - HW)))

    spatial_blocks = HW_pad // tile

    # ---- batch several images per grid step when spatial tiles are tiny ----
    NB = 1
    if spatial_blocks == 1 and N > 1:
        blk_b = C * tile * itemsize
        want = max(1, target_block_bytes // max(1, blk_b))
        for d in range(1, N + 1):
            if N % d == 0 and d <= want and (N // d) * spatial_blocks >= 2:
                NB = d

    grid = (N // NB, spatial_blocks)

    # ---- VMEM budget: x/out double-buffered, weights single-buffered ----
    blk_bytes = NB * C * tile * itemsize
    w_bytes = (p1 * C + p1 + p2 * p1 + p2 + p2 + 1) * itemsize
    interm_bytes = (p1 + p2 + 2) * tile * 4
    est = 4 * blk_bytes + 2 * w_bytes + 2 * NB * interm_bytes
    vmem_limit = int(min(max(2 * est, 32 << 20), 48 << 20))   # safe on v5e/v6e/v7x

    xo_spec = pl.BlockSpec((NB, C, tile), lambda b, j: (b, 0, j))
    const = lambda b, j: (0, 0)

    def cspec(shape):
        # Constant block index -> single-buffer; freed VMEM goes to bigger tiles.
        return pl.BlockSpec(shape, const, pipeline_mode=pl.Buffered(1))

    out3d = pl.pallas_call(
        _self_mask_kernel,
        out_shape=jax.ShapeDtypeStruct((N, C, HW_pad), x3d.dtype),
        grid_spec=pltpu.PrefetchScalarGridSpec(
            num_scalar_prefetch=0,
            grid=grid,
            in_specs=[
                xo_spec,                      # x tile
                cspec((p1, C)), cspec((p1, 1)),   # w1 (BN1 folded), bn1 shift
                cspec((p2, p1)), cspec((p2, 1)),  # w2 (BN2 folded), bn2 shift
                cspec((p2, 1)), cspec((1, 1)),    # w3 column (BN3 folded), bn3 shift + 1
            ],
            out_specs=xo_spec,
        ),
        compiler_params=pltpu.CompilerParams(
            dimension_semantics=("parallel", "parallel"),
            vmem_limit_bytes=vmem_limit),
    )(x3d, w1, b1, w2, b2, w3, b3)

    if pad_to:
        out3d = out3d[:, :, :HW]
    return out3d.reshape(N, C, H, W)


# ----------------------------- parameter handling -----------------------------

def make_raw_params(key, inplanes, planes=1):
    """PyTorch-style raw parameters: 1x1 conv weights (cout, cin) + BN stats."""
    assert planes == 1, "self_mask_block broadcast requires planes == 1"
    p1, p2 = inplanes // 4, inplanes // 16
    ks = jax.random.split(key, 6)

    def conv_w(k, cout, cin):
        return jax.random.normal(k, (cout, cin), jnp.float32) * 0.05

    def bn(k, ch):
        kg, kb, km, kv = jax.random.split(k, 4)
        return dict(
            gamma=1.0 + 0.1 * jax.random.normal(kg, (ch,), jnp.float32),
            beta=0.1 * jax.random.normal(kb, (ch,), jnp.float32),
            mean=0.1 * jax.random.normal(km, (ch,), jnp.float32),
            var=jnp.abs(jax.random.normal(kv, (ch,), jnp.float32)) + 0.5,
        )

    return dict(
        conv1=conv_w(ks[0], p1, inplanes), bn1=bn(ks[1], p1),
        conv2=conv_w(ks[2], p2, p1),       bn2=bn(ks[3], p2),
        conv3=conv_w(ks[4], planes, p2),   bn3=bn(ks[5], planes),
    )


def fold_params(raw, eps=1e-5, dtype=jnp.float32):
    """Fold BN (inference) scales into the conv weights and the +1 into the last shift."""
    def fold(bn):
        scale = bn["gamma"] / jnp.sqrt(bn["var"] + eps)
        shift = bn["beta"] - bn["mean"] * scale
        return scale, shift

    s1, t1 = fold(raw["bn1"])
    s2, t2 = fold(raw["bn2"])
    s3, t3 = fold(raw["bn3"])
    f = lambda a: a.astype(dtype)
    return dict(
        w1=f(raw["conv1"] * s1[:, None]), b1=f(t1[:, None]),      # (p1, C), (p1, 1)
        w2=f(raw["conv2"] * s2[:, None]), b2=f(t2[:, None]),      # (p2, p1), (p2, 1)
        w3=f((raw["conv3"] * s3[:, None]).T),                     # (p2, 1) column
        b3=f((t3 + 1.0).reshape(1, 1)),                           # (1, 1) = bn3 shift + 1
    )


def reference_forward(x_nchw, raw, eps=1e-5):
    """Pure-JAX reference (unfolded convs + BN) for correctness checking."""
    N, C, H, W = x_nchw.shape
    x3d = x_nchw.reshape(N, C, H * W)

    def bn(h, p):
        inv = p["gamma"] / jnp.sqrt(p["var"] + eps)
        return (h - p["mean"][None, :, None]) * inv[None, :, None] + p["beta"][None, :, None]

    h = jnp.einsum("oc,ncl->nol", raw["conv1"], x3d)
    h = jnp.maximum(bn(h, raw["bn1"]), 0.0)
    h = jnp.einsum("oc,ncl->nol", raw["conv2"], h)
    h = jnp.maximum(bn(h, raw["bn2"]), 0.0)
    a = jnp.einsum("oc,ncl->nol", raw["conv3"], h)
    a = bn(a, raw["bn3"])
    out = (a + 1.0) * x3d
    return out.reshape(N, C, H, W)


# TODO(synk): only BatchNorm inference mode is implemented (running-stat updates
# of training mode are not part of this forward kernel).

if __name__ == "__main__":
    key = jax.random.PRNGKey(0)

    def run_case(n, c, h, w, dtype, atol, rtol, k):
        kx, kp = jax.random.split(k)
        x = jax.random.normal(kx, (n, c, h, w), jnp.float32)
        raw = make_raw_params(kp, c, planes=1)
        params = fold_params(raw, dtype=dtype)
        x_in = x.astype(dtype)
        out = jax.block_until_ready(self_mask_block_forward(x_in, params))
        ref = reference_forward(x_in.astype(jnp.float32), raw)
        assert out.shape == x.shape
        assert out.dtype == x_in.dtype
        assert jnp.allclose(out.astype(jnp.float32), ref, atol=atol, rtol=rtol), \
            f"mismatch vs reference (n={n}, c={c}, hw={h}x{w}, dtype={dtype})"

    k1, k2, k3 = jax.random.split(key, 3)
    # lane-aligned HW (256), no padding, tiled spatial axis
    run_case(2, 64, 16, 16, jnp.float32, 1e-3, 1e-3, k1)
    # ragged HW (7x7=49): full-HW block, no padding, 2 images per grid step
    run_case(4, 32, 7, 7, jnp.float32, 1e-3, 1e-3, k2)
    # bf16 I/O path (f32 accumulation + f32 epilogue)
    run_case(2, 64, 16, 16, jnp.bfloat16, 1e-1, 1e-1, k3)

    print("KERNEL_OK")
</pallas_src>

<mosaic_0001>
module attributes {stable_mosaic.version = 11 : i64} {
  func.func @_self_mask_kernel(%arg0: i32, %arg1: i32, %arg2: memref<1x64x256xf32, #tpu.memory_space<vmem>>, %arg3: memref<16x64xf32, #tpu.memory_space<vmem>>, %arg4: memref<16x1xf32, #tpu.memory_space<vmem>>, %arg5: memref<4x16xf32, #tpu.memory_space<vmem>>, %arg6: memref<4x1xf32, #tpu.memory_space<vmem>>, %arg7: memref<4x1xf32, #tpu.memory_space<vmem>>, %arg8: memref<1x1xf32, #tpu.memory_space<vmem>>, %arg9: memref<1x64x256xf32, #tpu.memory_space<vmem>>) attributes {dimension_semantics = [#tpu.dimension_semantics<parallel>, #tpu.dimension_semantics<parallel>], iteration_bounds = array<i64: 2, 1>, scalar_prefetch = 0 : i64, scratch_operands = 0 : i64, tpu.core_type = #tpu.core_type<tc>, window_params = [{transform_indices = @transform_0, window_bounds = array<i64: 1, 64, 256>}, {pipeline_mode = #tpu.pipeline_mode<synchronous>, transform_indices = @transform_1, window_bounds = array<i64: 16, 64>}, {pipeline_mode = #tpu.pipeline_mode<synchronous>, transform_indices = @transform_2, window_bounds = array<i64: 16, 1>}, {pipeline_mode = #tpu.pipeline_mode<synchronous>, transform_indices = @transform_3, window_bounds = array<i64: 4, 16>}, {pipeline_mode = #tpu.pipeline_mode<synchronous>, transform_indices = @transform_4, window_bounds = array<i64: 4, 1>}, {pipeline_mode = #tpu.pipeline_mode<synchronous>, transform_indices = @transform_5, window_bounds = array<i64: 4, 1>}, {pipeline_mode = #tpu.pipeline_mode<synchronous>, transform_indices = @transform_6, window_bounds = array<i64: 1, 1>}, {transform_indices = @transform_7, window_bounds = array<i64: 1, 64, 256>}]} {
    %c0 = arith.constant 0 : index
    %c0_0 = arith.constant 0 : index
    %0 = vector.load %arg3[%c0, %c0_0] : memref<16x64xf32, #tpu.memory_space<vmem>>, vector<16x64xf32>
    %c0_1 = arith.constant 0 : index
    %c0_2 = arith.constant 0 : index
    %1 = vector.load %arg5[%c0_1, %c0_2] : memref<4x16xf32, #tpu.memory_space<vmem>>, vector<4x16xf32>
    %c0_3 = arith.constant 0 : index
    %c0_4 = arith.constant 0 : index
    %2 = vector.load %arg4[%c0_3, %c0_4] : memref<16x1xf32, #tpu.memory_space<vmem>>, vector<16x1xf32>
    %c0_5 = arith.constant 0 : index
    %c0_6 = arith.constant 0 : index
    %3 = vector.load %arg6[%c0_5, %c0_6] : memref<4x1xf32, #tpu.memory_space<vmem>>, vector<4x1xf32>
    %c0_7 = arith.constant 0 : index
    %c0_8 = arith.constant 0 : index
    %4 = vector.load %arg7[%c0_7, %c0_8] : memref<4x1xf32, #tpu.memory_space<vmem>>, vector<4x1xf32>
    %c0_9 = arith.constant 0 : index
    %c0_10 = arith.constant 0 : index
    %5 = vector.load %arg8[%c0_9, %c0_10] : memref<1x1xf32, #tpu.memory_space<vmem>>, vector<1x1xf32>
    %c0_11 = arith.constant 0 : index
    %c0_12 = arith.constant 0 : index
    %c0_13 = arith.constant 0 : index
    %6 = vector.load %arg2[%c0_11, %c0_12, %c0_13] : memref<1x64x256xf32, #tpu.memory_space<vmem>>, vector<1x64x256xf32>
    %7 = vector.shape_cast %6 : vector<1x64x256xf32> to vector<64x256xf32>
    %cst = arith.constant dense<0.000000e+00> : vector<16x256xf32>
    %8 = tpu.matmul %0, %7, %cst {dimension_numbers = #tpu.dot_dimension_numbers<[1], [0], [0], [1], [0, 0, 1, 1], [], []>} : vector<16x64xf32>, vector<64x256xf32>, vector<16x256xf32> -> vector<16x256xf32>
    %9 = vector.broadcast %2 : vector<16x1xf32> to vector<16x256xf32>
    %10 = arith.addf %8, %9 : vector<16x256xf32>
    %cst_14 = arith.constant 0.000000e+00 : f32
    %11 = vector.broadcast %cst_14 : f32 to vector<16x256xf32>
    %12 = arith.maximumf %10, %11 : vector<16x256xf32>
    %cst_15 = arith.constant dense<0.000000e+00> : vector<4x256xf32>
    %13 = tpu.matmul %1, %12, %cst_15 {dimension_numbers = #tpu.dot_dimension_numbers<[1], [0], [0], [1], [0, 0, 1, 1], [], []>} : vector<4x16xf32>, vector<16x256xf32>, vector<4x256xf32> -> vector<4x256xf32>
    %14 = vector.broadcast %3 : vector<4x1xf32> to vector<4x256xf32>
    %15 = arith.addf %13, %14 : vector<4x256xf32>
    %cst_16 = arith.constant 0.000000e+00 : f32
    %16 = vector.broadcast %cst_16 : f32 to vector<4x256xf32>
    %17 = arith.maximumf %15, %16 : vector<4x256xf32>
    %18 = vector.broadcast %4 : vector<4x1xf32> to vector<4x256xf32>
    %19 = arith.mulf %17, %18 : vector<4x256xf32>
    %cst_17 = arith.constant dense<0.000000e+00> : vector<256xf32>
    %20 = vector.multi_reduction <add>, %19, %cst_17 [0] : vector<4x256xf32> to vector<256xf32>
    %21 = vector.shape_cast %20 : vector<256xf32> to vector<1x256xf32>
    %22 = vector.broadcast %5 : vector<1x1xf32> to vector<1x256xf32>
    %23 = arith.addf %21, %22 : vector<1x256xf32>
    %24 = vector.broadcast %23 : vector<1x256xf32> to vector<64x256xf32>
    %25 = arith.mulf %24, %7 : vector<64x256xf32>
    %c0_18 = arith.constant 0 : index
    %c0_19 = arith.constant 0 : index
    %c0_20 = arith.constant 0 : index
    %26 = vector.load %arg9[%c0_18, %c0_19, %c0_20] : memref<1x64x256xf32, #tpu.memory_space<vmem>>, vector<1x64x256xf32>
    %27 = vector.shape_cast %26 : vector<1x64x256xf32> to vector<64x256xf32>
    %28 = vector.shape_cast %25 : vector<64x256xf32> to vector<1x64x256xf32>
    tpu.vector_store %arg9[%c0_18, %c0_19, %c0_20], %28 {strides = array<i32>} : memref<1x64x256xf32, #tpu.memory_space<vmem>>, vector<1x64x256xf32>,
    return
  }
  func.func @transform_0(%arg0: i32, %arg1: i32) -> (i32, i32, i32) {
    %c0_i32 = arith.constant 0 : i32
    %c0_i32_0 = arith.constant 0 : i32
    return %arg0, %c0_i32, %arg1 : i32, i32, i32
  }
  func.func @transform_1(%arg0: i32, %arg1: i32) -> (i32, i32) {
    %c0_i32 = arith.constant 0 : i32
    %c0_i32_0 = arith.constant 0 : i32
    %c0_i32_1 = arith.constant 0 : i32
    return %c0_i32, %c0_i32_0 : i32, i32
  }
  func.func @transform_2(%arg0: i32, %arg1: i32) -> (i32, i32) {
    %c0_i32 = arith.constant 0 : i32
    %c0_i32_0 = arith.constant 0 : i32
    %c0_i32_1 = arith.constant 0 : i32
    return %c0_i32, %c0_i32_0 : i32, i32
  }
  func.func @transform_3(%arg0: i32, %arg1: i32) -> (i32, i32) {
    %c0_i32 = arith.constant 0 : i32
    %c0_i32_0 = arith.constant 0 : i32
    %c0_i32_1 = arith.constant 0 : i32
    return %c0_i32, %c0_i32_0 : i32, i32
  }
  func.func @transform_4(%arg0: i32, %arg1: i32) -> (i32, i32) {
    %c0_i32 = arith.constant 0 : i32
    %c0_i32_0 = arith.constant 0 : i32
    %c0_i32_1 = arith.constant 0 : i32
    return %c0_i32, %c0_i32_0 : i32, i32
  }
  func.func @transform_5(%arg0: i32, %arg1: i32) -> (i32, i32) {
    %c0_i32 = arith.constant 0 : i32
    %c0_i32_0 = arith.constant 0 : i32
    %c0_i32_1 = arith.constant 0 : i32
    return %c0_i32, %c0_i32_0 : i32, i32
  }
  func.func @transform_6(%arg0: i32, %arg1: i32) -> (i32, i32) {
    %c0_i32 = arith.constant 0 : i32
    %c0_i32_0 = arith.constant 0 : i32
    %c0_i32_1 = arith.constant 0 : i32
    return %c0_i32, %c0_i32_0 : i32, i32
  }
  func.func @transform_7(%arg0: i32, %arg1: i32) -> (i32, i32, i32) {
    %c0_i32 = arith.constant 0 : i32
    %c0_i32_0 = arith.constant 0 : i32
    return %arg0, %c0_i32, %arg1 : i32, i32, i32
  }
}

</mosaic_0001>

<bundles_post_ra>
// kernel: tpu_custom_call.1
= control target key start
LH: loop header
LB: loop body
LE: loop exit
PB: predicated region body
PF: predicated region fallthrough
CT: control target
= control target key end

     0   :  { %s1131_s0 = inlined_call_operand.hbm [shape: f32[2,64,256], index: 0, kind: input, shape index: {}]   ;;  %s1132_s1 = inlined_call_operand.vmem [shape: f32[16,64], index: 1, kind: input, shape index: {}]   ;;  %s1133_s2 = inlined_call_operand.vmem [shape: f32[16,1], index: 2, kind: input, shape index: {}]   ;;  %s1134_s3 = inlined_call_operand.vmem [shape: f32[4,16], index: 3, kind: input, shape index: {}]   ;;  %s1135_s4 = inlined_call_operand.vmem [shape: f32[4,1], index: 4, kind: input, shape index: {}]   ;;  %s1136_s5 = inlined_call_operand.vmem [shape: f32[4,1], index: 5, kind: input, shape index: {}]   ;;  %s1137_s6 = inlined_call_operand.<no memory space> [shape: f32[1,1], index: 6, kind: input, shape index: {}]   ;;  %s1138_s7 = inlined_call_operand.hbm [shape: f32[2,64,256], index: 7, kind: output, shape index: {}]  }
   0x1   :  { %v12_v0 = vstv %s1137_s6 }
   0x2   :  { %13 = vst [vmem:[#allocation2] sm:$0x1] %v12_v0 }
   0x3   :  { %14 = vsyncpa [#allocation4], 0 }
   0x4   :  { %16 = vsyncpa [#allocation4 + $0x1], 0 }
   0x5   :  { %17 = vsyncpa [#allocation5], 0 }
   0x6   :  { %19 = vsyncpa [#allocation5 + $0x1], 0  ;;  %s885_s26 = smov 0   ;;  %s887_s27 = smov 0  }
   0x7   :  { %s889_s28 = smov 0   ;;  %s891_s29 = smov 0  }
   0x8   :  { %s893_s30 = smov 0   ;;  %s895_s8 = smov 0  }
   0x9 LB: > { %s630_s6 = sadd.s32 4294967295, %s835_s8   ;;  %s631_s9 = sadd.s32 4294967294, %s835_s8   ;;  %s835_s8 = sphi %s895_s8, %s25_s8   ;;  %s831_s30 = sphi %s893_s30, %s1150_s30   ;;  %s827_s29 = sphi %s891_s29, %s1149_s29   ;;  %s823_s28 = sphi %s889_s28, %s1148_s28   ;;  %s819_s27 = sphi %s887_s27, %s1147_s27   ;;  %s815_s26 = sphi %s885_s26, %s1146_s26  }
   0xa   : > { %s37_s10 = sadd.s32 1, %s831_s30  ;;  %s46_s11 = sadd.s32 1, %s823_s28 }
   0xb   : > { %p39_p0 = scmp.ge.s32.totalorder %s37_s10, 2  ;;  %p53_p1 = scmp.ne.s32.totalorder %s823_s28, %s819_s27 }
   0xc   : > { %p54_p2 = scmp.eq.s32.totalorder %s835_s8, 0  ;;  %p59_p3 = scmp.ne.s32.totalorder %s819_s27, %s815_s26 }
   0xd   : > { %s1152_s10 = smov (%p39_p0, %s37_s10), 0  ;;  %p60_p5 = scmp.eq.s32.totalorder %s630_s6, 0 }
   0xe   : > { %1140 = sst [smem:[#allocation9_spill]] %s1152_s10  ;;  %p926_p4 = por %p54_p2, %p53_p1 }
   0xf   : > { %s41_s13 = ssub.s32 %s831_s30, %s1152_s10  ;;  %p211_p6 = scmp.eq.s32.totalorder %s630_s6, 1 }
  0x10   : > { %p44_p7 = scmp.eq.s32.totalorder %s41_s13, 0  ;;  %p932_p8 = por %p60_p5, %p59_p3 }
  0x11   : > { %p936_p9 = por %p211_p6, %p53_p1  ;;  %p217_p10 = scmp.eq.s32.totalorder %s631_s9, 1 }
  0x12   : > { %s941_s16 = scalar_select %p44_p7, %s823_s28, %s46_s11  }
  0x13   : > { %p943_p11 = por %p217_p10, %p59_p3  ;;  %p633_p12 = scmp.ge.s32.totalorder %s835_s8, 2 }
  0x14   : > { %p665_p13 = scmp.lt.s32.totalorder %s835_s8, 2  ;;  %s255_s18 = sand.u32 1, %s823_s28  }
  0x15   : > { %s634_s19 = sshll.u32 %s255_s18, 7  ;;  %s651_s20 = sshll.u32 %s831_s30, 7 }
  0x16   : > { %s266_s23 = scalar_lea.hbm %s1131_s0, %s651_s20  ;;  %s259_s24 = scalar_lea.vmem [#allocation3], %s634_s19 }
  0x17   : > { %s269_s25 = sshll.u32 %s259_s24, 4  ;;  %s267_s6 = sshll.u32 %s266_s23, 4  ;;  %s270_s25 = int_to_ptr.vmem [resolvable:$true] %s269_s25  ;;  %s268_s6 = int_to_ptr.hbm [resolvable:$true] %s267_s6 }
  0x18   : > { %p658_p0 = pnand %p665_p13, %p926_p4  ;;  %p637_p1 = scmp.ge.s32.totalorder %s835_s8, 1 }
  0x19   : > { %s256_s9 = scalar_lea.sflag [#allocation4], %s255_s18  ;;  %s837_s11 = smov 256  }
  0x1a   : > { %s838_s13 = smov 16   ;;  %p277_p2 = scmp.lt.s32.totalorder %s835_s8, 3 }
  0x1b   : > { %660 = dma.hbm_to_vmem [thread:$0]  (!%p658_p0), %s268_s6, 2048, %s270_s25, %s256_s9, %s837_s11, %s837_s11, %s838_s13  }
  0x1c   : > { %p278_p3 = pnand %p637_p1, %p277_p2 }
  0x1d   : > { %s959_s10 = sand.u32 (!%p278_p3), 1, %s819_s27  }
  0x1e   : > { %281 = sbr.rel (%p278_p3) target bundleno = 368 (0x170), region = 48  ;;  %s638_s19 = sshll.u32 (!%p278_p3), %s959_s10, 7 }
  0x1f   : > { %s284_s20 = scalar_lea.sflag (!%p278_p3), [#allocation4], %s959_s10  ;;  %s965_s12 = scalar_lea.vmem (!%p278_p3), [#allocation3], %s638_s19 }
  0x23   : > { %806 = dma.done.wait (%p932_p8), %s284_s20, 2048  }
  0x24   : > { %808 = vsyncadd (%p932_p8), %s284_s20, 4294965248  ;;  %v839_v1 = vmov 0   ;;  %v972_v2 = vld [vmem:[%s965_s12 + $0x70] sm:$0xff]  ;;  %v975_v3 = vld [vmem:[%s965_s12 + $0x78] sm:$0xff]  ;;  %vm355_vm0 = vcmask 523264   ;;  %vm417_vm1 = vcmask 130048  }
  0x25   : > { %720 = vset.pattern.permute.xlu0 %v839_v1  ;;  %721 = vset.pattern.permute.xlu1 %v839_v1  ;;  %v978_v4 = vld [vmem:[%s965_s12 + $0x60] sm:$0xff]  ;;  %v983_v5 = vld [vmem:[%s965_s12 + $0x68] sm:$0xff]  ;;  %v986_v6 = vld [vmem:[%s965_s12 + $0x50] sm:$0xff]  ;;  %vm470_vm2 = vcmask 1043456   ;;  %s1063_s18 = scalar_lea.vmem [#allocation6], %s638_s19  ;;  %s652_s19 = sshll.u32 %s827_s29, 7 }
  0x26   : > { %722 = vset.pattern.permute.xlu2 %v839_v1  ;;  %370 = vmatpush.msra.mxu0 %v972_v2  ;;  %v989_v7 = vld [vmem:[%s965_s12 + $0x58] sm:$0xff]  ;;  %v994_v8 = vld [vmem:[%s965_s12 + $0x40] sm:$0xff]  ;;  %v997_v9 = vld [vmem:[%s965_s12 + $0x48] sm:$0xff]  ;;  %s539_s23 = scalar_lea.hbm %s1138_s7, %s652_s19  ;;  %s540_s29 = sshll.u32 %s1063_s18, 4  ;;  %s541_s29 = int_to_ptr.vmem [resolvable:$true] %s540_s29 }
  0x27   : > { %393 = vmatpush.msra.mxu1 %v975_v3  ;;  %v325_v10 = vld [vmem:[%s1133_s2 + $0x8] sm:$0xff]  ;;  %v1005_v11 = vld [vmem:[%s965_s12 + $0x30] sm:$0xff]  ;;  %v1008_v12 = vld [vmem:[%s965_s12 + $0x38] sm:$0xff]  ;;  %s542_s24 = sshll.u32 %s539_s23, 4  ;;  %s526_s25 = scalar_lea.sflag [#allocation5], %s959_s10  ;;  %s543_s24 = int_to_ptr.hbm [resolvable:$true] %s542_s24 }
  0x28   : > { %371 = vmatpush.msra.mxu0 %v978_v4  ;;  %352 = vperm.xlu0 %720, %v325_v10   ;;  %v1013_v13 = vld [vmem:[%s965_s12 + $0x20] sm:$0xff]  ;;  %v1016_v14 = vld [vmem:[%s965_s12 + $0x28] sm:$0xff]  ;;  %v1021_v15 = vld [vmem:[%s965_s12 + $0x10] sm:$0xff]  ;;  %s767_s6 = sshra.s32 %s543_s24, 4  ;;  %s773_s20 = scalar_lea.hbm %s1138_s7, 256  ;;  %s768_s6 = int_to_ptr.hbm [resolvable:$true] %s767_s6 }
  0x29   : > { %394 = vmatpush.msra.mxu1 %v983_v5  ;;  %v1024_v16 = vld [vmem:[%s965_s12 + $0x18] sm:$0xff]  ;;  %v1032_v18 = vld [vmem:[%s965_s12] sm:$0xff]  ;;  %v1035_v19 = vld [vmem:[%s965_s12 + $0x8] sm:$0xff]  ;;  %s769_s9 = scalar_lea.hbm %s768_s6, 128  ;;  %p774_p7 = scmp.lt.s32.totalorder %s768_s6, %s1138_s7 }
  0x2a   : > { %372 = vmatpush.msra.mxu0 %v986_v6  ;;  %v324_v17 = vld [vmem:[%s1133_s2] sm:$0xff]  ;;  %v322_v21 = vld [vmem:[%s1132_s1 + $0x8] sm:$0xff]  ;;  %p770_p4 = scmp.ne.s32.totalorder %s768_s6, %s769_s9  ;;  %p775_p8 = scmp.lt.s32.totalorder %s773_s20, %s769_s9 }
  0x2b   : > { %395 = vmatpush.msra.mxu1 %v989_v7  ;;  %v321_v20 = vld [vmem:[%s1132_s1] sm:$0xff] }
  0x2c   : > { %373 = vmatpush.msra.mxu0 %v994_v8  ;;  %v326_v22 = vld [vmem:[%s1135_s4] sm:$0xf]  ;;  %p771_p5 = pnand %p770_p4, %p936_p9  ;;  %p776_p10 = por %p775_p8, %p774_p7 }
  0x2d   : > { %396 = vmatpush.msra.mxu1 %v997_v9  ;;  %v328_v23 = vld [vmem:[#allocation2] sm:$0x1]  ;;  %414 = vperm.xlu1 %721, %v326_v22  }
  0x2e   : > { %374 = vmatpush.msra.mxu0 %v1005_v11  ;;  %487 = vperm.xlu2 %722, %v328_v23   ;;  %v327_v24 = vld [vmem:[%s1136_s5] sm:$0xf]  ;;  %p772_p6 = pneg %p771_p5 }
  0x2f   : > { %397 = vmatpush.msra.mxu1 %v1008_v12  ;;  %v323_v39 = vld [vmem:[%s1134_s3] sm:$0xf] }
  0x30   : > { %375 = vmatpush.msra.mxu0 %v1013_v13  ;;  %347 = vperm.xlu0 %720, %v324_v17   ;;  %p777_p13 = pnand %p776_p10, %p772_p6 }
  0x31   : > { %398 = vmatpush.msra.mxu1 %v1016_v14 }
  0x32   : > { %376 = vmatpush.msra.mxu0 %v1021_v15 }
  0x33   : > { %399 = vmatpush.msra.mxu1 %v1024_v16 }
  0x34   : > { %377 = vmatpush.msra.mxu0 %v1032_v18 }
  0x35   : > { %400 = vmatpush.msra.mxu1 %v1035_v19  ;;  %640 = vmatmul.msk.f32.vlgmr.msra.gmra.mxu0 %vm355_vm0, %v321_v20 }
  0x36   : > { %642 = vmatmul.msk.f32.vlgmr.msra.gmra.mxu1 %vm355_vm0, %v321_v20  ;;  %465 = vperm.xlu1 %721, %v327_v24  }
  0x3d   : > { %641 = vmatmul.msk.f32.gmra.mxu0 %vm355_vm0, %v322_v21 }
  0x3e   : > { %643 = vmatmul.msk.f32.gmra.mxu1 %vm355_vm0, %v322_v21 }
  0x88   : > { %v488_v58 = vpop.permute.xlu2 %487 }
  0x89   : > { %v490_v63 = vperm.slane %v488_v58, 0 }
  0x9a   : > { %v353_v25 = vpop.permute.xlu0 %352 }
  0x9f   : > { %v415_v40 = vpop.permute.xlu1 %414 }
  0xa2   : > { %v348_v28 = vpop.permute.xlu0 %347 }
  0xa8   : > { %v466_v47 = vpop.permute.xlu1 %465 }
  0xb2   : > { %v379_v26 = vpop.f32.mrf.mxu0 }
  0xb3   : > { %v402_v27 = vpop.f32.mrf.mxu1  ;;  %v380_v31 = vadd.f32 %v379_v26, %v348_v28 }
  0xb4   : > { %v403_v32 = vadd.f32 %v402_v27, %v348_v28 }
  0xb5   : > { %v408_v37 = vmax.f32 %v380_v31, 0.0 }
  0xb6   : > { %v409_v38 = vmax.f32 %v403_v32, 0.0 }
  0xba   : > { %v382_v29 = vpop.f32.mrf.mxu0 }
  0xbb   : > { %v405_v30 = vpop.f32.mrf.mxu1  ;;  %v383_v33 = vadd.f32 %v382_v29, %v353_v25 }
  0xbc   : > { %v406_v34 = vadd.f32 %v405_v30, %v353_v25 }
  0xbd   : > { %v410_v35 = vmax.f32 %v383_v33, 0.0 }
  0xbe   : > { %v411_v36 = vmax.f32 %v406_v34, 0.0 }
  0xbf   : > { %435 = vmatpush.msra.mxu2 %v410_v35 }
  0xc0   : > { %455 = vmatpush.msra.mxu3 %v411_v36 }
  0xc1   : > { %436 = vmatpush.msra.mxu2 %v408_v37 }
  0xc2   : > { %456 = vmatpush.msra.mxu3 %v409_v38  ;;  %644 = vmatmul.msk.f32.vlgmr.msra.gmra.mxu2 %vm417_vm1, %v323_v39 }
  0xc3   : > { %645 = vmatmul.msk.f32.vlgmr.msra.gmra.mxu3 %vm417_vm1, %v323_v39 }
 0x145   : > { %v438_v41 = vpop.f32.mrf.mxu2 }
 0x146   : > { %v458_v42 = vpop.f32.mrf.mxu3  ;;  %v439_v43 = vadd.f32 %v438_v41, %v415_v40 }
 0x147   : > { %v459_v44 = vadd.f32 %v458_v42, %v415_v40 }
 0x148   : > { %v461_v45 = vmax.f32 %v439_v43, 0.0 }
 0x149   : > { %v462_v46 = vmax.f32 %v459_v44, 0.0 }
 0x14a   : > { %v468_v48 = vmul.f32 %v466_v47, %v461_v45 }
 0x14b   : > { %v469_v49 = vmul.f32 %v466_v47, %v462_v46 }
 0x14c   : > { %v471_v50 = vsel %vm470_vm2, %v468_v48, 0.0 }
 0x14d   : > { %v478_v51 = vsel %vm470_vm2, %v469_v49, 0.0  ;;  %v472_v52 = vrot.slane %v471_v50, 4 }
 0x14e   : > { %v479_v53 = vrot.slane %v478_v51, 4 }
 0x14f   : > { %v473_v54 = vadd.f32 %v472_v52, %v471_v50 }
 0x150   : > { %v480_v55 = vadd.f32 %v479_v53, %v478_v51 }
 0x151   : > { %v474_v56 = vrot.slane %v473_v54, 2 }
 0x152   : > { %v481_v57 = vrot.slane %v480_v55, 2 }
 0x153   : > { %v475_v59 = vadd.f32 %v474_v56, %v473_v54 }
 0x154   : > { %v482_v60 = vadd.f32 %v481_v57, %v480_v55 }
 0x155   : > { %v476_v61 = vrot.slane %v475_v59, 1 }
 0x156   : > { %v483_v62 = vrot.slane %v482_v60, 1 }
 0x157   : > { %v477_v0 = vadd.f32 %v476_v61, %v475_v59 }
 0x158   : > { %v484_v1 = vadd.f32 %v483_v62, %v482_v60 }
 0x159   : > { %v491_v10 = vadd.f32 %v490_v63, %v477_v0 }
 0x15a   : > { %v492_v17 = vadd.f32 %v490_v63, %v484_v1 }
 0x15b   : > { %v493_v20 = vmul.f32 %v491_v10, %v1032_v18  ;;  %v495_v22 = vmul.f32 %v491_v10, %v1021_v15  ;;  %v497_v24 = vmul.f32 %v491_v10, %v1013_v13  ;;  %v499_v15 = vmul.f32 %v491_v10, %v1005_v11 }
 0x15c   : > { %v494_v21 = vmul.f32 %v492_v17, %v1035_v19  ;;  %v496_v23 = vmul.f32 %v492_v17, %v1024_v16  ;;  %v498_v18 = vmul.f32 %v492_v17, %v1016_v14  ;;  %v500_v13 = vmul.f32 %v492_v17, %v1008_v12 }
 0x15d   : > { %509 = vst [vmem:[%s1063_s18] sm:$0xff] %v493_v20  ;;  %v501_v16 = vmul.f32 %v491_v10, %v994_v8  ;;  %v502_v19 = vmul.f32 %v492_v17, %v997_v9  ;;  %v503_v14 = vmul.f32 %v491_v10, %v986_v6  ;;  %v504_v11 = vmul.f32 %v492_v17, %v989_v7 }
 0x15e   : > { %510 = vst [vmem:[%s1063_s18 + $0x8] sm:$0xff] %v494_v21  ;;  %v505_v8 = vmul.f32 %v491_v10, %v978_v4  ;;  %v506_v9 = vmul.f32 %v492_v17, %v983_v5  ;;  %v507_v6 = vmul.f32 %v491_v10, %v972_v2  ;;  %v508_v12 = vmul.f32 %v492_v17, %v975_v3 }
 0x15f   : > { %511 = vst [vmem:[%s1063_s18 + $0x10] sm:$0xff] %v495_v22 }
 0x160   : > { %512 = vst [vmem:[%s1063_s18 + $0x18] sm:$0xff] %v496_v23 }
 0x161   : > { %513 = vst [vmem:[%s1063_s18 + $0x20] sm:$0xff] %v497_v24 }
 0x162   : > { %514 = vst [vmem:[%s1063_s18 + $0x28] sm:$0xff] %v498_v18 }
 0x163   : > { %515 = vst [vmem:[%s1063_s18 + $0x30] sm:$0xff] %v499_v15 }
 0x164   : > { %516 = vst [vmem:[%s1063_s18 + $0x38] sm:$0xff] %v500_v13 }
 0x165   : > { %517 = vst [vmem:[%s1063_s18 + $0x40] sm:$0xff] %v501_v16 }
 0x166   : > { %518 = vst [vmem:[%s1063_s18 + $0x48] sm:$0xff] %v502_v19 }
 0x167   : > { %519 = vst [vmem:[%s1063_s18 + $0x50] sm:$0xff] %v503_v14 }
 0x168   : > { %520 = vst [vmem:[%s1063_s18 + $0x58] sm:$0xff] %v504_v11 }
 0x169   : > { %521 = vst [vmem:[%s1063_s18 + $0x60] sm:$0xff] %v505_v8 }
 0x16a   : > { %522 = vst [vmem:[%s1063_s18 + $0x68] sm:$0xff] %v506_v9 }
 0x16b   : > { %523 = vst [vmem:[%s1063_s18 + $0x70] sm:$0xff] %v507_v6 }
 0x16c   : > { %524 = vst [vmem:[%s1063_s18 + $0x78] sm:$0xff] %v508_v12 }
 0x16d   : > { %780 = shalt.err (!%p777_p13)
}
 0x16e   : > { %s840_s10 = smov 256   ;;  %s841_s18 = smov 16  }
 0x16f   : > { %655 = dma.vmem_to_hbm [thread:$0]  (%p936_p9), %s541_s29, 2048, %s543_s24, %s526_s25, %s840_s10, %s840_s10, %s841_s18  }
 0x170 PF: > { %s557_s19 = sand.u32 1, %s815_s26   ;;  %p662_p0 = pnand %p633_p12, %p943_p11 }
 0x171   : > { %s558_s21 = scalar_lea.sflag [#allocation5], %s557_s19 }
 0x172   : > { %p663_p1 = pneg %p662_p0 }
 0x174   : > { %810 = dma.done.wait (%p663_p1), %s558_s21, 2048  }
 0x175   : > { %812 = vsyncadd (%p663_p1), %s558_s21, 4294965248  ;;  %s25_s8 = sadd.s32 1, %s835_s8   ;;  %s1145_s15 = sld [smem:[#allocation9_spill]] }
 0x176   : > { %p22_p2 = scmp.ge.s32.totalorder %s25_s8, 4   ;;  %s1146_s26 = smov %s819_s27 }
 0x177   : > { %s1147_s27 = smov %s823_s28  ;;  %s1148_s28 = smov %s941_s16 }
 0x178   : > { %s1149_s29 = smov %s831_s30  ;;  %24 = sbr.rel (!%p22_p2) target bundleno = 9 (0x9), region = 93 }
 0x17b   : > { %s1150_s30 = smov %s1145_s15 }
 0x17d   :  { %564 = vsyncpa [#allocation4], 1 }
 0x17e   :  { %566 = vsyncpa [#allocation4 + $0x1], 1 }
 0x17f   :  { %567 = vsyncpa [#allocation5], 1 }
 0x180   :  { %569 = vsyncpa [#allocation5 + $0x1], 1 }

</bundles_post_ra>
